<compile_context>
chip_gen: v7x
topology: tpu7x:2x2x1
jax: 0.10.0
libtpu: 0.0.40
codegen_flags: <defaults>
</compile_context>

<pallas_src>
import jax
import jax.numpy as jnp
from jax.experimental import pallas as pl
from jax.experimental.pallas import tpu as pltpu

PAD = 128  # lane width (one vreg row per packed vector)


def _weighted_loss_kernel(in_ref, out_ref):
    x = in_ref[...]                  # (8, PAD) f32 slab
    rl = x[0:1, :]                   # regression losses
    rc = x[1:2, :]                   # regression coefficients
    cl = x[2:3, :]                   # classification losses
    cc = x[3:4, :]                   # classification coefficients

    # Padded lanes are all-zero: 0.5*exp(0)*0 + 0.5*0 == 0 and exp(0)*0 + 0.5*0 == 0,
    # so no masking is needed. Combine both families before the single XLU reduce.
    terms = (0.5 * jnp.exp(-rc) * rl + 0.5 * rc) + (jnp.exp(-cc) * cl + 0.5 * cc)
    out_ref[0, 0] = jnp.sum(terms)   # scalar -> SMEM


def _row(v, n):
    """Pad a length-n f32 vector out to one lane-dense row of length PAD."""
    return jnp.pad(v.astype(jnp.float32), (0, PAD - n))


def weighted_loss(reg_losses, cls_losses, reg_coeffs, cls_coeffs):
    """reg_losses/cls_losses: lists of scalar jnp arrays.
    reg_coeffs/cls_coeffs: 1-D f32 arrays of matching lengths (the learnable params)."""
    n_reg = len(reg_losses)
    n_cls = len(cls_losses)
    assert n_reg == reg_coeffs.shape[0], 'Loss mismatch, check how many reg_losses are passed'
    assert n_cls == cls_coeffs.shape[0], 'Loss mismatch, check how many cls_losses are passed'

    reg_vec = (jnp.stack([jnp.asarray(l, jnp.float32).reshape(()) for l in reg_losses])
               if n_reg > 0 else jnp.zeros((0,), jnp.float32))
    cls_vec = (jnp.stack([jnp.asarray(l, jnp.float32).reshape(()) for l in cls_losses])
               if n_cls > 0 else jnp.zeros((0,), jnp.float32))

    # One (8, PAD) slab, one DMA: rows 0..3 carry data, rows 4..7 are zero filler.
    slab = jnp.concatenate([
        _row(reg_vec, n_reg),
        _row(reg_coeffs, n_reg),
        _row(cls_vec, n_cls),
        _row(cls_coeffs, n_cls),
        jnp.zeros((4 * PAD,), jnp.float32),
    ]).reshape(8, PAD)

    out = pl.pallas_call(
        _weighted_loss_kernel,
        out_shape=jax.ShapeDtypeStruct((1, 1), jnp.float32),
        in_specs=[pl.BlockSpec((8, PAD), lambda: (0, 0))],
        out_specs=pl.BlockSpec(memory_space=pltpu.SMEM),
    )(slab)

    return out.reshape((1,))  # matches torch.zeros(1)-shaped accumulator


if __name__ == "__main__":
    key = jax.random.PRNGKey(0)
    n_reg, n_cls = 3, 2

    # Deterministic "parameter" init, mimicking random.random() in [0, 1).
    k_rc, k_cc, k_rl, k_cl = jax.random.split(key, 4)
    reg_coeffs = jax.random.uniform(k_rc, (n_reg,), jnp.float32)
    cls_coeffs = jax.random.uniform(k_cc, (n_cls,), jnp.float32)

    # Example scalar losses (as would come from smooth-L1 / L2 / BCE reductions).
    reg_losses = list(jax.random.uniform(k_rl, (n_reg,), jnp.float32) * 2.0)
    cls_losses = list(jax.random.uniform(k_cl, (n_cls,), jnp.float32) * 1.5)

    out = weighted_loss(reg_losses, cls_losses, reg_coeffs, cls_coeffs)
    jax.block_until_ready(out)

    # Pure-JAX reference check.
    ref = jnp.zeros((1,), jnp.float32)
    for i in range(n_reg):
        ref = ref + 0.5 * jnp.exp(-reg_coeffs[i]) * reg_losses[i] + 0.5 * reg_coeffs[i]
    for i in range(n_cls):
        ref = ref + jnp.exp(-cls_coeffs[i]) * cls_losses[i] + 0.5 * cls_coeffs[i]
    assert jnp.allclose(out, ref, rtol=1e-5, atol=1e-6), (out, ref)

    print("KERNEL_OK")
</pallas_src>

<mosaic_0001>
module attributes {stable_mosaic.version = 11 : i64} {
  func.func @_weighted_loss_kernel(%arg0: memref<8x128xf32, #tpu.memory_space<vmem>>, %arg1: memref<1x1xf32, #tpu.memory_space<smem>>) attributes {dimension_semantics = [], scalar_prefetch = 0 : i64, scratch_operands = 0 : i64, tpu.core_type = #tpu.core_type<tc>} {
    %c0 = arith.constant 0 : index
    %c0_0 = arith.constant 0 : index
    %0 = vector.load %arg0[%c0, %c0_0] : memref<8x128xf32, #tpu.memory_space<vmem>>, vector<8x128xf32>
    %1 = vector.extract_strided_slice %0 {offsets = [0, 0], sizes = [1, 128], strides = [1, 1]} : vector<8x128xf32> to vector<1x128xf32>
    %2 = vector.extract_strided_slice %0 {offsets = [1, 0], sizes = [1, 128], strides = [1, 1]} : vector<8x128xf32> to vector<1x128xf32>
    %3 = vector.extract_strided_slice %0 {offsets = [2, 0], sizes = [1, 128], strides = [1, 1]} : vector<8x128xf32> to vector<1x128xf32>
    %4 = vector.extract_strided_slice %0 {offsets = [3, 0], sizes = [1, 128], strides = [1, 1]} : vector<8x128xf32> to vector<1x128xf32>
    %cst = arith.constant 0.000000e+00 : f32
    %5 = vector.broadcast %cst : f32 to vector<1x128xf32>
    %6 = arith.subf %5, %2 : vector<1x128xf32>
    %7 = math.exp %6 : vector<1x128xf32>
    %cst_1 = arith.constant 5.000000e-01 : f32
    %8 = vector.broadcast %cst_1 : f32 to vector<1x128xf32>
    %9 = arith.mulf %8, %7 : vector<1x128xf32>
    %10 = arith.mulf %9, %1 : vector<1x128xf32>
    %cst_2 = arith.constant 5.000000e-01 : f32
    %11 = vector.broadcast %cst_2 : f32 to vector<1x128xf32>
    %12 = arith.mulf %11, %2 : vector<1x128xf32>
    %13 = arith.addf %10, %12 : vector<1x128xf32>
    %cst_3 = arith.constant 0.000000e+00 : f32
    %14 = vector.broadcast %cst_3 : f32 to vector<1x128xf32>
    %15 = arith.subf %14, %4 : vector<1x128xf32>
    %16 = math.exp %15 : vector<1x128xf32>
    %17 = arith.mulf %16, %3 : vector<1x128xf32>
    %cst_4 = arith.constant 5.000000e-01 : f32
    %18 = vector.broadcast %cst_4 : f32 to vector<1x128xf32>
    %19 = arith.mulf %18, %4 : vector<1x128xf32>
    %20 = arith.addf %17, %19 : vector<1x128xf32>
    %21 = arith.addf %13, %20 : vector<1x128xf32>
    %22 = vector.shape_cast %21 : vector<1x128xf32> to vector<1x1x128xf32>
    %cst_5 = arith.constant dense<0.000000e+00> : vector<1xf32>
    %23 = vector.multi_reduction <add>, %22, %cst_5 [1, 2] : vector<1x1x128xf32> to vector<1xf32>
    %24 = vector.shape_cast %23 : vector<1xf32> to vector<1x1x1xf32>
    %25 = vector.extract %24[0, 0, 0] : f32 from vector<1x1x1xf32>
    %c0_6 = arith.constant 0 : index
    %c0_7 = arith.constant 0 : index
    %26 = memref.load %arg1[%c0_6, %c0_7] : memref<1x1xf32, #tpu.memory_space<smem>>
    memref.store %25, %arg1[%c0_6, %c0_7] : memref<1x1xf32, #tpu.memory_space<smem>>
    return
  }
}

</mosaic_0001>

<bundles_post_ra>
// kernel: tpu_custom_call.1
= control target key start
LH: loop header
LB: loop body
LE: loop exit
PB: predicated region body
PF: predicated region fallthrough
CT: control target
= control target key end

     0   :  { %6 = vsyncpa [#allocation3], 0  ;;  %s146_s0 = inlined_call_operand.hbm [shape: f32[8,128], index: 0, kind: input, shape index: {}]   ;;  %s147_s1 = inlined_call_operand.hbm [shape: f32[1,1], index: 1, kind: output, shape index: {}]  }
   0x1   :  { %7 = vsyncpa [#allocation4], 0  ;;  %s110_s6 = smov [#allocation2]   ;;  %s74_s10 = scalar_lea.hbm %s146_s0, 128 }
   0x2   :  { %s14_s7 = sshll.u32 %s110_s6, 4  ;;  %p75_p0 = scmp.ne.s32.totalorder %s146_s0, %s74_s10  ;;  %s15_s7 = int_to_ptr.vmem [resolvable:$true] %s14_s7 }
   0x3   :  { %p78_p1 = scmp.lt.u32.totalorder %s74_s10, %s146_s0 }
   0x5   :  { %p80_p2 = pnand %p78_p1, %p75_p0 }
   0x7   :  { %83 = shalt.err (!%p80_p2)
}
   0x8   :  { %s84_s15 = scalar_lea.vmem %s15_s7, 128  ;;  %p89_p4 = scmp.lt.s32.totalorder %s15_s7, %s15_s7 }
   0x9   :  { %p85_p3 = scmp.ne.s32.totalorder %s15_s7, %s84_s15  ;;  %p90_p5 = scmp.lt.s32.totalorder %s84_s15, %s84_s15 }
   0xb   :  { %p91_p6 = por %p90_p5, %p89_p4 }
   0xd   :  { %p92_p7 = pnand %p91_p6, %p85_p3 }
   0xf   :  { %95 = shalt.err (!%p92_p7)
}
  0x10   :  { %17 = dma.hbm_to_vmem [thread:$0]  %s146_s0, 128, %s15_s7, [#allocation3]  }
  0x11   :  { %106 = dma.done.wait [#allocation3], 128  }
  0x12   :  { %107 = vsyncadd [#allocation3], 4294967168  ;;  %v21_v0 = vld [vmem:[#allocation2] sm:$0xff]  ;;  %vm41_vm0 = vcmask 1040384   ;;  %s96_s20 = scalar_lea.hbm %s147_s1, 16 }
  0x13   :  { %v22_v1 = vsub.f32 0.0, %v21_v0  ;;  %v27_v3 = vrot.slane %v21_v0, 7  ;;  %v30_v4 = vmul.f32 0.5, %v21_v0  ;;  %p97_p8 = scmp.ne.s32.totalorder %s147_s1, %s96_s20  ;;  %p100_p9 = scmp.lt.u32.totalorder %s96_s20, %s147_s1 }
  0x15   :  { %v23_v2 = vmul.f32 1.442695, %v22_v1  ;;  %p102_p10 = pnand %p100_p9, %p97_p8 }
  0x17   :  { %72 = vpow2.f32 %v23_v2 }
  0x21   :  { %v73_v5 = vpop.eup %72 }
  0x22   :  { %v25_v6 = vmul.f32 0.5, %v73_v5  ;;  %v32_v7 = vmul.f32 %v73_v5, %v27_v3 }
  0x24   :  { %v29_v8 = vmul.f32 %v27_v3, %v25_v6  ;;  %v33_v9 = vadd.f32 %v32_v7, %v30_v4 }
  0x26   :  { %v31_v10 = vadd.f32 %v30_v4, %v29_v8  ;;  %v35_v11 = vrot.slane %v33_v9, 2 }
  0x28   :  { %v37_v12 = vadd.f32 %v35_v11, %v31_v10 }
  0x2a   :  { %v39_v13 = vrot.slane %v37_v12, 1 }
  0x2c   :  { %v42_v14 = vsel %vm41_vm0, %v39_v13, 0.0 }
  0x2d   :  { %43 = vadd.xlane.f32.xlu0 %v42_v14 }
  0xba   :  { %v44_v15 = vpop.xlane.xlu0 %43 }
  0xbb   :  { %v45_v16 = vrot.slane %v44_v15, 4 }
  0xbd   :  { %v46_v17 = vadd.f32 %v45_v16, %v44_v15 }
  0xbf   :  { %v47_v18 = vrot.slane %v46_v17, 2 }
  0xc1   :  { %v48_v19 = vadd.f32 %v47_v18, %v46_v17 }
  0xc3   :  { %v49_v20 = vrot.slane %v48_v19, 1 }
  0xc5   :  { %v50_v21 = vadd.f32 %v49_v20, %v48_v19 }
  0xc7   :  { %68 = vpush %v50_v21 }
  0xf8   :  { %s69_s0 = spop %68 }
  0xf9   :  { %53 = sst [smem:[#allocation5]] %s69_s0 }
  0xfa   :  { %105 = shalt.err (!%p102_p10)
}
  0xfb   :  { %s111_s25 = smov [#allocation5]  }
  0xfc   :  { %61 = dma.smem_to_hbm %s111_s25, 16, %s147_s1, [#allocation4]  }
  0xfd   :  { %108 = dma.done.wait [#allocation4], 16  }
  0xfe   :  { %109 = vsyncadd [#allocation4], 4294967280 }
  0xff   :  { %65 = sfence }
 0x100   :  { %66 = vsyncpa [#allocation3], 1 }
 0x101   :  { %67 = vsyncpa [#allocation4], 1 }

</bundles_post_ra>
